<compile_context>
chip_gen: v5e
topology: v5e:2x2
jax: 0.10.0
libtpu: 0.0.40
codegen_flags: <defaults>
</compile_context>

<pallas_src>
import jax
import jax.numpy as jnp
from jax.experimental import pallas as pl
from jax.experimental.pallas import tpu as pltpu


def _make_kernel(state_dim, hidden_dim, mxu_dtype):
    """Build the fused forward kernel for fixed (static) layer sizes."""

    def kernel(x_ref, w1_ref, w2_ref, o_ref):
        x = x_ref[...]                                   # (tb, state_dim)  f32

        # Static ref-slices: zero-cost views, load only the rows we need.
        w1 = w1_ref[:state_dim, :]                       # (state_dim, hidden)
        b1 = w1_ref[state_dim:state_dim + 1, :]          # (1, hidden)
        w2 = w2_ref[:hidden_dim, :]                      # (hidden, action_pad)
        b2 = w2_ref[hidden_dim:hidden_dim + 1, :]        # (1, action_pad)

        # fc1 + bias + ReLU.  MXU inputs optionally bf16; accumulation f32;
        # all element-wise math stays f32 (v5e VPU/EUP have no bf16 path).
        h = jnp.dot(x.astype(mxu_dtype), w1.astype(mxu_dtype),
                    preferred_element_type=jnp.float32)
        h = jnp.maximum(h + b1, 0.0)

        # fc2 + bias.  Padded action columns carry weight 0 / bias -1e30.
        logits = jnp.dot(h.astype(mxu_dtype), w2.astype(mxu_dtype),
                         preferred_element_type=jnp.float32)
        logits = logits + b2

        # Numerically stable softmax over dim=1 (the action axis).  Padded
        # lanes: exp(-1e30 - m) underflows to exactly 0, so they contribute
        # nothing to the denominator and get probability 0.
        m = jnp.max(logits, axis=1, keepdims=True)       # XLU (free slot)
        e = jnp.exp(logits - m)                          # EUP
        denom = jnp.sum(e, axis=1, keepdims=True)
        # approx=True would use the EUP vrcp (free slot) but drifts row sums
        # beyond 1e-5; keep exact here.
        inv = pl.reciprocal(denom, approx=False)
        o_ref[...] = (e * inv).astype(o_ref.dtype)       # 128-lane unmasked vst

    return kernel


def _pad_action_lanes(w2_aug, lane_multiple=128):
    """Pad fc2's output columns up to a lane multiple.

    Extra columns get weight 0 and bias -1e30, so their softmax probability is
    exactly 0 and the real columns are numerically unchanged.
    """
    rows, action_dim = w2_aug.shape
    action_pad = ((action_dim + lane_multiple - 1) // lane_multiple) * lane_multiple
    if action_pad == action_dim:
        return w2_aug
    pad = jnp.zeros((rows, action_pad - action_dim), w2_aug.dtype)
    pad = pad.at[-1, :].set(-1e30)       # bias row of the pad columns
    return jnp.concatenate([w2_aug, pad], axis=1)


def policy_net_forward(x, w1_aug, w2_aug, *, block_batch=None,
                       mxu_dtype=jnp.float32, pad_out_lanes=True):
    """Fused PolicyNet forward.

    x:       (batch, state_dim)            f32
    w1_aug:  (state_dim + 1, hidden_dim)   f32, last row is b1
    w2_aug:  (hidden_dim + 1, action_dim)  f32, last row is b2
    block_batch: None -> gridless single-shot (small batch);
                 int  -> batch tile size (multiple of 8) for the tiled path.
    mxu_dtype: jnp.float32 (exact) or jnp.bfloat16 (MXU fast path on v6e/v7x).
    pad_out_lanes: pad the action axis to 128 lanes inside the call so output
                 stores are unmasked; pad is sliced off before returning.
    """
    batch, state_dim = x.shape
    hidden_dim = w1_aug.shape[1]
    action_dim = w2_aug.shape[1]
    assert w1_aug.shape[0] == state_dim + 1
    assert w2_aug.shape[0] == hidden_dim + 1

    # TODO(synk): if params are static, hoist this padding out of the call.
    w2_call = _pad_action_lanes(w2_aug) if pad_out_lanes else w2_aug
    out_dim = w2_call.shape[1]

    kernel = _make_kernel(state_dim, hidden_dim, mxu_dtype)

    if block_batch is None:
        # Gridless: everything VMEM-resident, one kernel invocation, no grid
        # loop / pipeline bookkeeping.
        out = pl.pallas_call(
            kernel,
            out_shape=jax.ShapeDtypeStruct((batch, out_dim), jnp.float32),
            in_specs=[pl.BlockSpec(memory_space=pltpu.MemorySpace.VMEM)] * 3,
            out_specs=pl.BlockSpec(memory_space=pltpu.MemorySpace.VMEM),
        )(x, w1_aug, w2_call)
        return out if out_dim == action_dim else out[:, :action_dim]

    # Batch-tiled path: x/out tiled along batch, weights resident across steps.
    tb = block_batch
    n_tiles = pl.cdiv(batch, tb)
    padded = n_tiles * tb
    x_p = x if padded == batch else jnp.pad(x, ((0, padded - batch), (0, 0)))

    out = pl.pallas_call(
        kernel,
        out_shape=jax.ShapeDtypeStruct((padded, out_dim), jnp.float32),
        grid=(n_tiles,),
        in_specs=[
            pl.BlockSpec((tb, state_dim), lambda i: (i, 0)),
            pl.BlockSpec((state_dim + 1, hidden_dim), lambda i: (0, 0)),
            pl.BlockSpec((hidden_dim + 1, out_dim), lambda i: (0, 0)),
        ],
        out_specs=pl.BlockSpec((tb, out_dim), lambda i: (i, 0)),
        compiler_params=pltpu.CompilerParams(
            dimension_semantics=("parallel",)),
    )(x_p, w1_aug, w2_call)
    return out[:batch, :action_dim]


def init_params(key, state_dim, hidden_dim, action_dim):
    """Deterministic synthetic parameters (PyTorch-Linear-like uniform init)."""
    k1, k2, k3, k4 = jax.random.split(key, 4)
    bound1 = 1.0 / (state_dim ** 0.5)
    bound2 = 1.0 / (hidden_dim ** 0.5)
    # stored as [in, out] (transpose of PyTorch's [out, in])
    w1 = jax.random.uniform(k1, (state_dim, hidden_dim), jnp.float32, -bound1, bound1)
    b1 = jax.random.uniform(k2, (hidden_dim,), jnp.float32, -bound1, bound1)
    w2 = jax.random.uniform(k3, (hidden_dim, action_dim), jnp.float32, -bound2, bound2)
    b2 = jax.random.uniform(k4, (action_dim,), jnp.float32, -bound2, bound2)
    return w1, b1, w2, b2


def pack_params(w1, b1, w2, b2):
    """Fold biases into the weight matrices as an extra trailing row."""
    w1_aug = jnp.concatenate([w1, b1[None, :]], axis=0)   # (state_dim+1, hidden)
    w2_aug = jnp.concatenate([w2, b2[None, :]], axis=0)   # (hidden+1, action)
    return w1_aug, w2_aug


def reference_forward(x, w1, b1, w2, b2):
    h = jnp.maximum(x @ w1 + b1[None, :], 0.0)
    logits = h @ w2 + b2[None, :]
    return jax.nn.softmax(logits, axis=1)


if __name__ == "__main__":
    # Small shapes consistent with the module: state_dim=4, hidden_dim=32, action_dim=8
    batch, state_dim, hidden_dim, action_dim = 2, 4, 32, 8

    key = jax.random.PRNGKey(0)
    kx, kp, kb = jax.random.split(key, 3)
    x = jax.random.normal(kx, (batch, state_dim), jnp.float32)
    w1, b1, w2, b2 = init_params(kp, state_dim, hidden_dim, action_dim)
    w1_aug, w2_aug = pack_params(w1, b1, w2, b2)

    ref = reference_forward(x, w1, b1, w2, b2)

    # 1) Gridless, f32 MXU (exact path), lane-padded output
    out = jax.block_until_ready(policy_net_forward(x, w1_aug, w2_aug))
    assert out.shape == (batch, action_dim)
    assert jnp.allclose(out, ref, atol=1e-5, rtol=1e-5)
    assert jnp.allclose(jnp.sum(out, axis=1), 1.0, atol=1e-5)

    # 2) Gridless, bf16 MXU inputs (v6e/v7x fast path), element-wise stays f32
    out_bf16 = jax.block_until_ready(
        policy_net_forward(x, w1_aug, w2_aug, mxu_dtype=jnp.bfloat16))
    assert jnp.allclose(out_bf16, ref, atol=1e-2, rtol=1e-2)
    assert jnp.allclose(jnp.sum(out_bf16, axis=1), 1.0, atol=1e-5)

    # 3) Gridless with padding disabled (exercise the masked-store fallback)
    out_np = jax.block_until_ready(
        policy_net_forward(x, w1_aug, w2_aug, pad_out_lanes=False))
    assert jnp.allclose(out_np, ref, atol=1e-5, rtol=1e-5)

    # 4) Batch-tiled path (resident weights, "parallel" batch axis), with a
    #    non-multiple batch to exercise the padding logic.
    big_batch = 300
    xb = jax.random.normal(kb, (big_batch, state_dim), jnp.float32)
    out_big = jax.block_until_ready(
        policy_net_forward(xb, w1_aug, w2_aug, block_batch=128))
    ref_big = reference_forward(xb, w1, b1, w2, b2)
    assert out_big.shape == (big_batch, action_dim)
    assert jnp.allclose(out_big, ref_big, atol=1e-5, rtol=1e-5)
    assert jnp.allclose(jnp.sum(out_big, axis=1), 1.0, atol=1e-5)

    print("KERNEL_OK")
</pallas_src>

<mosaic_0001>
module attributes {stable_mosaic.version = 11 : i64} {
  func.func @kernel(%arg0: memref<2x4xf32, #tpu.memory_space<vmem>>, %arg1: memref<5x32xf32, #tpu.memory_space<vmem>>, %arg2: memref<33x128xf32, #tpu.memory_space<vmem>>, %arg3: memref<2x128xf32, #tpu.memory_space<vmem>>) attributes {dimension_semantics = [], scalar_prefetch = 0 : i64, scratch_operands = 0 : i64, tpu.core_type = #tpu.core_type<tc>} {
    %c0 = arith.constant 0 : index
    %c0_0 = arith.constant 0 : index
    %0 = vector.load %arg0[%c0, %c0_0] : memref<2x4xf32, #tpu.memory_space<vmem>>, vector<2x4xf32>
    %c0_1 = arith.constant 0 : index
    %c0_2 = arith.constant 0 : index
    %1 = vector.load %arg1[%c0_1, %c0_2] : memref<5x32xf32, #tpu.memory_space<vmem>>, vector<4x32xf32>
    %c4 = arith.constant 4 : index
    %c0_3 = arith.constant 0 : index
    %2 = vector.load %arg1[%c4, %c0_3] : memref<5x32xf32, #tpu.memory_space<vmem>>, vector<1x32xf32>
    %c0_4 = arith.constant 0 : index
    %c0_5 = arith.constant 0 : index
    %3 = vector.load %arg2[%c0_4, %c0_5] : memref<33x128xf32, #tpu.memory_space<vmem>>, vector<32x128xf32>
    %c32 = arith.constant 32 : index
    %c0_6 = arith.constant 0 : index
    %4 = vector.load %arg2[%c32, %c0_6] : memref<33x128xf32, #tpu.memory_space<vmem>>, vector<1x128xf32>
    %cst = arith.constant dense<0.000000e+00> : vector<2x32xf32>
    %5 = tpu.matmul %0, %1, %cst {dimension_numbers = #tpu.dot_dimension_numbers<[1], [0], [0], [1], [0, 0, 1, 1], [], []>} : vector<2x4xf32>, vector<4x32xf32>, vector<2x32xf32> -> vector<2x32xf32>
    %6 = vector.broadcast %2 : vector<1x32xf32> to vector<2x32xf32>
    %7 = arith.addf %5, %6 : vector<2x32xf32>
    %cst_7 = arith.constant 0.000000e+00 : f32
    %8 = vector.broadcast %cst_7 : f32 to vector<2x32xf32>
    %9 = arith.maximumf %7, %8 : vector<2x32xf32>
    %cst_8 = arith.constant dense<0.000000e+00> : vector<2x128xf32>
    %10 = tpu.matmul %9, %3, %cst_8 {dimension_numbers = #tpu.dot_dimension_numbers<[1], [0], [0], [1], [0, 0, 1, 1], [], []>} : vector<2x32xf32>, vector<32x128xf32>, vector<2x128xf32> -> vector<2x128xf32>
    %11 = vector.broadcast %4 : vector<1x128xf32> to vector<2x128xf32>
    %12 = arith.addf %10, %11 : vector<2x128xf32>
    %cst_9 = arith.constant dense<0xFF800000> : vector<2xf32>
    %13 = vector.multi_reduction <maximumf>, %12, %cst_9 [1] : vector<2x128xf32> to vector<2xf32>
    %14 = vector.shape_cast %13 : vector<2xf32> to vector<2x1xf32>
    %15 = vector.broadcast %14 : vector<2x1xf32> to vector<2x128xf32>
    %16 = arith.subf %12, %15 : vector<2x128xf32>
    %17 = math.exp %16 : vector<2x128xf32>
    %cst_10 = arith.constant dense<0.000000e+00> : vector<2xf32>
    %18 = vector.multi_reduction <add>, %17, %cst_10 [1] : vector<2x128xf32> to vector<2xf32>
    %19 = vector.shape_cast %18 : vector<2xf32> to vector<2x1xf32>
    %20 = tpu.reciprocal %19 : vector<2x1xf32> -> vector<2x1xf32>
    %21 = vector.broadcast %20 : vector<2x1xf32> to vector<2x128xf32>
    %22 = arith.mulf %17, %21 : vector<2x128xf32>
    %c0_11 = arith.constant 0 : index
    %c0_12 = arith.constant 0 : index
    %23 = vector.load %arg3[%c0_11, %c0_12] : memref<2x128xf32, #tpu.memory_space<vmem>>, vector<2x128xf32>
    tpu.vector_store %arg3[%c0_11, %c0_12], %22 {strides = array<i32>} : memref<2x128xf32, #tpu.memory_space<vmem>>, vector<2x128xf32>,
    return
  }
}

</mosaic_0001>

<bundles_post_ra>
// kernel: tpu_custom_call.1
= control target key start
LH: loop header
LB: loop body
LE: loop exit
PB: predicated region body
PF: predicated region fallthrough
CT: control target
= control target key end

     0   :  { %8 = vsyncpa [#allocation3], 0  ;;  %s320_s0 = inlined_call_operand.hbm [shape: f32[2,4], index: 0, kind: input, shape index: {}]   ;;  %s321_s1 = inlined_call_operand.hbm [shape: f32[5,32], index: 1, kind: input, shape index: {}]   ;;  %s322_s2 = inlined_call_operand.hbm [shape: f32[33,128], index: 2, kind: input, shape index: {}]   ;;  %s323_s3 = inlined_call_operand.hbm [shape: f32[2,128], index: 3, kind: output, shape index: {}]  }
   0x1   :  { %9 = vsyncpa [#allocation6], 0  ;;  %s27_s14 = sshll.u32 %s321_s1, 4  ;;  %s28_s14 = int_to_ptr.hbm [resolvable:$true] %s27_s14 }
   0x2   :  { %10 = vsyncpa [#allocation4], 0  ;;  %s282_s15 = smov [#allocation5]   ;;  %s16_s19 = sshll.u32 %s320_s0, 4  ;;  %s17_s19 = int_to_ptr.hbm [resolvable:$true] %s16_s19 }
   0x3   :  { %s29_s16 = sshll.u32 %s282_s15, 4  ;;  %s283_s20 = smov [#allocation2]   ;;  %s30_s16 = int_to_ptr.vmem [resolvable:$true] %s29_s16 }
   0x4   :  { %32 = dma.hbm_to_vmem [thread:$0]  %s28_s14, 128, %s30_s16, [#allocation6]  }
   0x5   :  { %s18_s21 = sshll.u32 %s283_s20, 4  ;;  %s37_s24 = sshll.u32 %s322_s2, 4  ;;  %s19_s21 = int_to_ptr.vmem [resolvable:$true] %s18_s21  ;;  %s38_s24 = int_to_ptr.hbm [resolvable:$true] %s37_s24 }
   0x6   :  { %21 = dma.hbm_to_vmem [thread:$0]  %s17_s19, 32, %s19_s21, [#allocation3]  }
   0x7   :  { %s284_s1 = smov [#allocation7]   ;;  %s285_s26 = smov 128  }
   0x8   :  { %s39_s25 = sshll.u32 %s284_s1, 4  ;;  %s286_s27 = smov 8   ;;  %s40_s25 = int_to_ptr.vmem [resolvable:$true] %s39_s25 }
   0x9   :  { %45 = dma.hbm_to_vmem [thread:$0]  %s38_s24, 640, %s40_s25, [#allocation6], %s285_s26, %s285_s26, %s286_s27  }
   0xa   :  { %276 = dma.done.wait [#allocation3], 32  }
   0xb   :  { %277 = vsyncadd [#allocation3], 4294967264 }
   0xc   :  { %278 = dma.done.wait [#allocation6], 768  }
   0xd   :  { %279 = vsyncadd [#allocation6], 4294966528  ;;  %vm71_vm0 = vcmask 1043456   ;;  %vm67_vm1 = vcmask 31744   ;;  %v59_v0 = vld [vmem:[#allocation5] sm:$0xf] }
   0xe   :  { %v58_v1 = vld [vmem:[#allocation2] sm:$0x3]  ;;  %v64_v2 = vld [vmem:[#allocation7 + $0x18] sm:$0xff]  ;;  %165 = vmatpush.msk.msra.mxu0 %vm71_vm0, %v59_v0  ;;  %v62_v4 = vld [vmem:[#allocation7 + $0x8] sm:$0xff]  ;;  %vm97_vm2 = vcmask 261120   ;;  %vm121_vm3 = vcmask 1041408  }
   0xf   :  { %113 = vmatpush.msra.mxu1 %v64_v2  ;;  %166 = vmatmul.msk.f32.vlgmr.msra.gmra.mxu0 %vm67_vm1, %v58_v1  ;;  %v63_v3 = vld [vmem:[#allocation7 + $0x10] sm:$0xff]  ;;  %v61_v5 = vld [vmem:[#allocation7] sm:$0xff]  ;;  %v174_v6 = vld [vmem:[#allocation5 + $0x4] ss:$0 sm:$0xff]  ;;  %s287_s0 = smov [#allocation8]   ;;  %s154_s30 = sshll.u32 %s323_s3, 4  ;;  %s155_s30 = int_to_ptr.hbm [resolvable:$true] %s154_s30 }
  0x10   :  { %v175_v10 = vld [vmem:[#allocation7 + $0x20] ss:$0 sm:$0xff]  ;;  %s152_s2 = sshll.u32 %s287_s0, 4  ;;  %s153_s2 = int_to_ptr.vmem [resolvable:$true] %s152_s2 }
  0x11   :  { %114 = vmatpush.msra.mxu1 %v63_v3 }
  0x13   :  { %115 = vmatpush.msra.mxu1 %v62_v4 }
  0x15   :  { %116 = vmatpush.msra.mxu1 %v61_v5 }
  0x8c   :  { %v92_v7 = vpop.f32.mrf.mxu0 }
  0x8d   :  { %v93_v8 = vadd.f32 %v174_v6, %v92_v7 }
  0x8f   :  { %v95_v9 = vmax.f32 %v93_v8, 0.0 }
  0x91   :  { %167 = vmatmul.msk.f32.vlgmr.msra.gmra.mxu1 %vm97_vm2, %v95_v9 }
 0x10e   :  { %v118_v11 = vpop.f32.mrf.mxu1 }
 0x10f   :  { %v119_v12 = vadd.f32 %v175_v10, %v118_v11 }
 0x111   :  { %v122_v13 = vsel %vm121_vm3, %v119_v12, -inf }
 0x112   :  { %123 = vmax.xlane.f32.xlu0 %v122_v13 }
 0x185   :  { %v124_v14 = vpop.xlane.xlu0 %123 }
 0x186   :  { %v125_v15 = vsub.f32 %v119_v12, %v124_v14 }
 0x188   :  { %v126_v16 = vmul.f32 1.442695, %v125_v15 }
 0x18a   :  { %176 = vpow2.f32 %v126_v16 }
 0x190   :  { %v177_v17 = vpop.eup %176 }
 0x191   :  { %v128_v18 = vsel %vm121_vm3, %v177_v17, 0.0 }
 0x192   :  { %129 = vadd.xlane.f32.xlu0 %v128_v18 }
 0x205   :  { %v130_v19 = vpop.xlane.xlu0 %129 }
 0x206   :  { %178 = vrcp.f32 %v130_v19  ;;  %v142_v23 = vand.u32 2147483648, %v130_v19  ;;  %v140_v25 = vand.u32 2147483647, %v130_v19  ;;  %vm136_vm5 = vweird.f32 %v130_v19 }
 0x208   :  { %v143_v27 = vor.u32 1.1754944e-38, %v142_v23  ;;  %vm141_vm7 = vcmp.eq.f32.partialorder %v140_v25, 8.507059e+37 }
 0x20c   :  { %v179_v20 = vpop.eup %178 }
 0x20d   :  { %v132_v21 = vmul.f32 %v179_v20, %v130_v19  ;;  %vm137_vm4 = vweird.f32 %v179_v20 }
 0x20e   :  { %vm138_vm6 = vmor %vm136_vm5, %vm137_vm4 }
 0x20f   :  { %v133_v22 = vsub.f32 1.0, %v132_v21 }
 0x211   :  { %v134_v24 = vmul.f32 %v179_v20, %v133_v22 }
 0x213   :  { %v135_v26 = vadd.f32 %v179_v20, %v134_v24 }
 0x215   :  { %v139_v28 = vsel %vm138_vm6, %v179_v20, %v135_v26 }
 0x216   :  { %v144_v29 = vsel %vm141_vm7, %v143_v27, %v139_v28 }
 0x217   :  { %v145_v30 = vmul.f32 %v177_v17, %v144_v29 }
 0x219   :  { %146 = vst [vmem:[#allocation8] sm:$0x3] %v145_v30 }
 0x21a   :  { %157 = dma.vmem_to_hbm [thread:$0]  %s153_s2, 32, %s155_s30, [#allocation4]  }
 0x21b   :  { %280 = dma.done.wait [#allocation4], 32  }
 0x21c   :  { %281 = vsyncadd [#allocation4], 4294967264 }
 0x21d   :  { %162 = vsyncpa [#allocation3], 1 }
 0x21e   :  { %163 = vsyncpa [#allocation6], 1 }
 0x21f   :  { %164 = vsyncpa [#allocation4], 1 }

</bundles_post_ra>
